<compile_context>
chip_gen: v7x
topology: tpu7x:2x2x1
jax: 0.10.0
libtpu: 0.0.40
codegen_flags: <defaults>
</compile_context>

<pallas_src>
import jax
import jax.numpy as jnp
from jax import lax
from jax.experimental import pallas as pl
from jax.experimental.pallas import tpu as pltpu

LANE = 128            # batch elements packed along vreg lanes
SUB = 8               # sublane granularity for row padding
MAX_TILE_ROWS = 2048  # rows per grid step (2048*128*4B = 1 MiB block)
CHUNK_ROWS = 128      # rows per inner register-resident chunk
MIN_GRID_STEPS = 4    # target grid steps (pipelining + v7x two TensorCores)
HIDDEN = 10           # fc1 output features


def _mlp_kernel(x_ref, u_ref, v_ref, a_ref, c0_ref, o_ref):
    """Elementwise  y = c0 + sum_j a[j] * tanh(u[j] * x + v[j]).

    x_ref / o_ref : (tile_r, 128) lane-dense f32 slab (VMEM)
    u/v/a         : (10,) f32 in SMEM (pre-folded fc1/fc2 params)
    c0            : (1,)  f32 in SMEM
    """
    tile_r = x_ref.shape[0]
    chunk = min(CHUNK_ROWS, tile_r)
    n_chunks = tile_r // chunk  # tile_r is constructed to be divisible

    # Hoist SMEM scalar reads out of the per-chunk loop (JAX does not CSE the
    # resulting broadcasts; read each parameter exactly once).
    u = [u_ref[j] for j in range(HIDDEN)]
    v = [v_ref[j] for j in range(HIDDEN)]
    a = [a_ref[j] for j in range(HIDDEN)]
    c0 = c0_ref[0]

    def body(ci, carry):
        r0 = pl.multiple_of(ci * chunk, chunk)
        x = x_ref[pl.ds(r0, chunk), :]
        acc = jnp.full(x.shape, c0, dtype=x.dtype)
        # Static unroll over the 10 hidden units:
        # broadcast FMA (VPU) + tanh (EUP) + FMA (VPU) per unit.
        for j in range(HIDDEN):
            acc = acc + a[j] * jnp.tanh(u[j] * x + v[j])
        o_ref[pl.ds(r0, chunk), :] = acc
        return carry

    lax.fori_loop(0, n_chunks, body, 0, unroll=True)


def _fold_params(w1, b1, w2, b2):
    """sigmoid -> tanh refold, done once in f32 on the host side.

    y = b2 + sum_j w2[j] * sigmoid(w1[j]*x + b1[j])
      = (b2 + 0.5*sum(w2)) + sum_j (0.5*w2[j]) * tanh(0.5*w1[j]*x + 0.5*b1[j])
    """
    w1f = w1.reshape(-1).astype(jnp.float32)   # (10,)
    b1f = b1.reshape(-1).astype(jnp.float32)   # (10,)
    w2f = w2.reshape(-1).astype(jnp.float32)   # (10,)
    b2f = b2.reshape(-1).astype(jnp.float32)   # (1,)
    u = 0.5 * w1f
    v = 0.5 * b1f
    a = 0.5 * w2f
    c0 = b2f + 0.5 * jnp.sum(w2f)              # (1,)
    return u, v, a, c0


def _choose_tiling(n):
    rows = max(pl.cdiv(n, LANE), 1)
    rows = pl.cdiv(rows, SUB) * SUB                       # multiple of 8 sublanes
    tile_r = min(MAX_TILE_ROWS, rows)
    # Aim for >= MIN_GRID_STEPS grid steps when the batch allows it, so the
    # "parallel" axis can shard across v7x's two TensorCores and the pipeline
    # double-buffers.
    tile_r = min(tile_r, max(pl.cdiv(rows, MIN_GRID_STEPS), SUB))
    # Keep tile_r a clean multiple of the inner-chunk size (or of 8 sublanes).
    if tile_r >= CHUNK_ROWS:
        tile_r = (tile_r // CHUNK_ROWS) * CHUNK_ROWS
    else:
        tile_r = pl.cdiv(tile_r, SUB) * SUB
    rows_pad = pl.cdiv(rows, tile_r) * tile_r
    return tile_r, rows_pad


def simple_nn_forward(x, w1, b1, w2, b2):
    """Forward pass of SimpleNN.

    x : (N, 1) float32
    w1: (10, 1)  b1: (10,)   -- PyTorch fc1.weight / fc1.bias layout
    w2: (1, 10)  b2: (1,)    -- PyTorch fc2.weight / fc2.bias layout
    returns (N, 1) float32
    """
    n = x.shape[0]
    x_flat = x.reshape(-1).astype(jnp.float32)

    tile_r, rows_pad = _choose_tiling(n)
    total = rows_pad * LANE

    if total == n:
        # Aligned batch: packing is a pure reshape, no extra HBM pass.
        x_packed = x_flat.reshape(rows_pad, LANE)
    else:
        # TODO(synk): for very large unaligned N, pad only the final row block
        # (or accept/return the packed (rows, 128) layout) to avoid a full
        # extra HBM copy; for unaligned small batches a single pad is fine.
        x_packed = jnp.pad(x_flat, (0, total - n)).reshape(rows_pad, LANE)

    u, v, a, c0 = _fold_params(w1, b1, w2, b2)

    smem_spec = pl.BlockSpec(memory_space=pltpu.MemorySpace.SMEM)

    out_packed = pl.pallas_call(
        _mlp_kernel,
        out_shape=jax.ShapeDtypeStruct((rows_pad, LANE), jnp.float32),
        grid_spec=pltpu.PrefetchScalarGridSpec(
            num_scalar_prefetch=0,
            grid=(rows_pad // tile_r,),
            in_specs=[
                pl.BlockSpec((tile_r, LANE), lambda i: (i, 0)),
                smem_spec,  # u  (0.5*w1)
                smem_spec,  # v  (0.5*b1)
                smem_spec,  # a  (0.5*w2)
                smem_spec,  # c0 (b2 + 0.5*sum(w2))
            ],
            out_specs=pl.BlockSpec((tile_r, LANE), lambda i: (i, 0)),
        ),
        compiler_params=pltpu.CompilerParams(
            dimension_semantics=("parallel",)),
    )(x_packed, u, v, a, c0)

    if total == n:
        return out_packed.reshape(n, 1)
    return out_packed.reshape(-1)[:n].reshape(n, 1)


def init_params(key):
    """Deterministic init with PyTorch nn.Linear-style uniform bounds."""
    k1, k2, k3, k4 = jax.random.split(key, 4)
    bound1 = 1.0  # 1/sqrt(fan_in=1)
    w1 = jax.random.uniform(k1, (10, 1), jnp.float32, -bound1, bound1)
    b1 = jax.random.uniform(k2, (10,), jnp.float32, -bound1, bound1)
    bound2 = 1.0 / jnp.sqrt(10.0)  # 1/sqrt(fan_in=10)
    w2 = jax.random.uniform(k3, (1, 10), jnp.float32, -bound2, bound2)
    b2 = jax.random.uniform(k4, (1,), jnp.float32, -bound2, bound2)
    return w1, b1, w2, b2


if __name__ == "__main__":
    key = jax.random.PRNGKey(0)
    k_params, k_x1, k_x2 = jax.random.split(key, 3)
    w1, b1, w2, b2 = init_params(k_params)

    def ref_fn(x):
        h = jax.nn.sigmoid(x @ w1.T + b1)
        return h @ w2.T + b2

    # Small, lane-unaligned batch (exercises pad + tail slice path).
    x_small = jax.random.normal(k_x1, (37, 1), jnp.float32)
    y_small = jax.block_until_ready(simple_nn_forward(x_small, w1, b1, w2, b2))
    assert y_small.shape == (37, 1)
    assert jnp.allclose(y_small, ref_fn(x_small), atol=1e-5, rtol=1e-5)

    # Aligned batch (pure-reshape packing, multi-step parallel grid).
    x_big = jax.random.normal(k_x2, (2048, 1), jnp.float32)
    y_big = jax.block_until_ready(simple_nn_forward(x_big, w1, b1, w2, b2))
    assert y_big.shape == (2048, 1)
    assert jnp.allclose(y_big, ref_fn(x_big), atol=1e-5, rtol=1e-5)

    print("KERNEL_OK")
</pallas_src>

<mosaic_0001>
module attributes {stable_mosaic.version = 11 : i64} {
  func.func @_mlp_kernel(%arg0: i32, %arg1: memref<8x128xf32, #tpu.memory_space<vmem>>, %arg2: memref<10xf32, #tpu.memory_space<smem>>, %arg3: memref<10xf32, #tpu.memory_space<smem>>, %arg4: memref<10xf32, #tpu.memory_space<smem>>, %arg5: memref<1xf32, #tpu.memory_space<smem>>, %arg6: memref<8x128xf32, #tpu.memory_space<vmem>>) attributes {dimension_semantics = [#tpu.dimension_semantics<parallel>], iteration_bounds = array<i64: 1>, scalar_prefetch = 0 : i64, scratch_operands = 0 : i64, tpu.core_type = #tpu.core_type<tc>, window_params = [{transform_indices = @transform_0, window_bounds = array<i64: 8, 128>}, {transform_indices = @transform_1, window_bounds = array<i64: 10>}, {transform_indices = @transform_2, window_bounds = array<i64: 10>}, {transform_indices = @transform_3, window_bounds = array<i64: 10>}, {transform_indices = @transform_4, window_bounds = array<i64: 1>}, {transform_indices = @transform_5, window_bounds = array<i64: 8, 128>}]} {
    %c0 = arith.constant 0 : index
    %0 = memref.load %arg2[%c0] : memref<10xf32, #tpu.memory_space<smem>>
    %c1 = arith.constant 1 : index
    %1 = memref.load %arg2[%c1] : memref<10xf32, #tpu.memory_space<smem>>
    %c2 = arith.constant 2 : index
    %2 = memref.load %arg2[%c2] : memref<10xf32, #tpu.memory_space<smem>>
    %c3 = arith.constant 3 : index
    %3 = memref.load %arg2[%c3] : memref<10xf32, #tpu.memory_space<smem>>
    %c4 = arith.constant 4 : index
    %4 = memref.load %arg2[%c4] : memref<10xf32, #tpu.memory_space<smem>>
    %c5 = arith.constant 5 : index
    %5 = memref.load %arg2[%c5] : memref<10xf32, #tpu.memory_space<smem>>
    %c6 = arith.constant 6 : index
    %6 = memref.load %arg2[%c6] : memref<10xf32, #tpu.memory_space<smem>>
    %c7 = arith.constant 7 : index
    %7 = memref.load %arg2[%c7] : memref<10xf32, #tpu.memory_space<smem>>
    %c8 = arith.constant 8 : index
    %8 = memref.load %arg2[%c8] : memref<10xf32, #tpu.memory_space<smem>>
    %c9 = arith.constant 9 : index
    %9 = memref.load %arg2[%c9] : memref<10xf32, #tpu.memory_space<smem>>
    %c0_0 = arith.constant 0 : index
    %10 = memref.load %arg3[%c0_0] : memref<10xf32, #tpu.memory_space<smem>>
    %c1_1 = arith.constant 1 : index
    %11 = memref.load %arg3[%c1_1] : memref<10xf32, #tpu.memory_space<smem>>
    %c2_2 = arith.constant 2 : index
    %12 = memref.load %arg3[%c2_2] : memref<10xf32, #tpu.memory_space<smem>>
    %c3_3 = arith.constant 3 : index
    %13 = memref.load %arg3[%c3_3] : memref<10xf32, #tpu.memory_space<smem>>
    %c4_4 = arith.constant 4 : index
    %14 = memref.load %arg3[%c4_4] : memref<10xf32, #tpu.memory_space<smem>>
    %c5_5 = arith.constant 5 : index
    %15 = memref.load %arg3[%c5_5] : memref<10xf32, #tpu.memory_space<smem>>
    %c6_6 = arith.constant 6 : index
    %16 = memref.load %arg3[%c6_6] : memref<10xf32, #tpu.memory_space<smem>>
    %c7_7 = arith.constant 7 : index
    %17 = memref.load %arg3[%c7_7] : memref<10xf32, #tpu.memory_space<smem>>
    %c8_8 = arith.constant 8 : index
    %18 = memref.load %arg3[%c8_8] : memref<10xf32, #tpu.memory_space<smem>>
    %c9_9 = arith.constant 9 : index
    %19 = memref.load %arg3[%c9_9] : memref<10xf32, #tpu.memory_space<smem>>
    %c0_10 = arith.constant 0 : index
    %20 = memref.load %arg4[%c0_10] : memref<10xf32, #tpu.memory_space<smem>>
    %c1_11 = arith.constant 1 : index
    %21 = memref.load %arg4[%c1_11] : memref<10xf32, #tpu.memory_space<smem>>
    %c2_12 = arith.constant 2 : index
    %22 = memref.load %arg4[%c2_12] : memref<10xf32, #tpu.memory_space<smem>>
    %c3_13 = arith.constant 3 : index
    %23 = memref.load %arg4[%c3_13] : memref<10xf32, #tpu.memory_space<smem>>
    %c4_14 = arith.constant 4 : index
    %24 = memref.load %arg4[%c4_14] : memref<10xf32, #tpu.memory_space<smem>>
    %c5_15 = arith.constant 5 : index
    %25 = memref.load %arg4[%c5_15] : memref<10xf32, #tpu.memory_space<smem>>
    %c6_16 = arith.constant 6 : index
    %26 = memref.load %arg4[%c6_16] : memref<10xf32, #tpu.memory_space<smem>>
    %c7_17 = arith.constant 7 : index
    %27 = memref.load %arg4[%c7_17] : memref<10xf32, #tpu.memory_space<smem>>
    %c8_18 = arith.constant 8 : index
    %28 = memref.load %arg4[%c8_18] : memref<10xf32, #tpu.memory_space<smem>>
    %c9_19 = arith.constant 9 : index
    %29 = memref.load %arg4[%c9_19] : memref<10xf32, #tpu.memory_space<smem>>
    %c0_20 = arith.constant 0 : index
    %30 = memref.load %arg5[%c0_20] : memref<1xf32, #tpu.memory_space<smem>>
    %c0_i32 = arith.constant 0 : i32
    %c8_i32 = arith.constant 8 : i32
    %31 = arith.muli %c0_i32, %c8_i32 : i32
    %32 = tpu.assume_multiple %31, 8 : i32
    %33 = arith.index_cast %32 : i32 to index
    %c0_21 = arith.constant 0 : index
    %34 = vector.load %arg1[%33, %c0_21] : memref<8x128xf32, #tpu.memory_space<vmem>>, vector<8x128xf32>
    %35 = vector.broadcast %30 : f32 to vector<8x128xf32>
    %36 = vector.broadcast %0 : f32 to vector<8x128xf32>
    %37 = arith.mulf %36, %34 : vector<8x128xf32>
    %38 = vector.broadcast %10 : f32 to vector<8x128xf32>
    %39 = arith.addf %37, %38 : vector<8x128xf32>
    %40 = math.tanh %39 : vector<8x128xf32>
    %41 = vector.broadcast %20 : f32 to vector<8x128xf32>
    %42 = arith.mulf %41, %40 : vector<8x128xf32>
    %43 = arith.addf %35, %42 : vector<8x128xf32>
    %44 = vector.broadcast %1 : f32 to vector<8x128xf32>
    %45 = arith.mulf %44, %34 : vector<8x128xf32>
    %46 = vector.broadcast %11 : f32 to vector<8x128xf32>
    %47 = arith.addf %45, %46 : vector<8x128xf32>
    %48 = math.tanh %47 : vector<8x128xf32>
    %49 = vector.broadcast %21 : f32 to vector<8x128xf32>
    %50 = arith.mulf %49, %48 : vector<8x128xf32>
    %51 = arith.addf %43, %50 : vector<8x128xf32>
    %52 = vector.broadcast %2 : f32 to vector<8x128xf32>
    %53 = arith.mulf %52, %34 : vector<8x128xf32>
    %54 = vector.broadcast %12 : f32 to vector<8x128xf32>
    %55 = arith.addf %53, %54 : vector<8x128xf32>
    %56 = math.tanh %55 : vector<8x128xf32>
    %57 = vector.broadcast %22 : f32 to vector<8x128xf32>
    %58 = arith.mulf %57, %56 : vector<8x128xf32>
    %59 = arith.addf %51, %58 : vector<8x128xf32>
    %60 = vector.broadcast %3 : f32 to vector<8x128xf32>
    %61 = arith.mulf %60, %34 : vector<8x128xf32>
    %62 = vector.broadcast %13 : f32 to vector<8x128xf32>
    %63 = arith.addf %61, %62 : vector<8x128xf32>
    %64 = math.tanh %63 : vector<8x128xf32>
    %65 = vector.broadcast %23 : f32 to vector<8x128xf32>
    %66 = arith.mulf %65, %64 : vector<8x128xf32>
    %67 = arith.addf %59, %66 : vector<8x128xf32>
    %68 = vector.broadcast %4 : f32 to vector<8x128xf32>
    %69 = arith.mulf %68, %34 : vector<8x128xf32>
    %70 = vector.broadcast %14 : f32 to vector<8x128xf32>
    %71 = arith.addf %69, %70 : vector<8x128xf32>
    %72 = math.tanh %71 : vector<8x128xf32>
    %73 = vector.broadcast %24 : f32 to vector<8x128xf32>
    %74 = arith.mulf %73, %72 : vector<8x128xf32>
    %75 = arith.addf %67, %74 : vector<8x128xf32>
    %76 = vector.broadcast %5 : f32 to vector<8x128xf32>
    %77 = arith.mulf %76, %34 : vector<8x128xf32>
    %78 = vector.broadcast %15 : f32 to vector<8x128xf32>
    %79 = arith.addf %77, %78 : vector<8x128xf32>
    %80 = math.tanh %79 : vector<8x128xf32>
    %81 = vector.broadcast %25 : f32 to vector<8x128xf32>
    %82 = arith.mulf %81, %80 : vector<8x128xf32>
    %83 = arith.addf %75, %82 : vector<8x128xf32>
    %84 = vector.broadcast %6 : f32 to vector<8x128xf32>
    %85 = arith.mulf %84, %34 : vector<8x128xf32>
    %86 = vector.broadcast %16 : f32 to vector<8x128xf32>
    %87 = arith.addf %85, %86 : vector<8x128xf32>
    %88 = math.tanh %87 : vector<8x128xf32>
    %89 = vector.broadcast %26 : f32 to vector<8x128xf32>
    %90 = arith.mulf %89, %88 : vector<8x128xf32>
    %91 = arith.addf %83, %90 : vector<8x128xf32>
    %92 = vector.broadcast %7 : f32 to vector<8x128xf32>
    %93 = arith.mulf %92, %34 : vector<8x128xf32>
    %94 = vector.broadcast %17 : f32 to vector<8x128xf32>
    %95 = arith.addf %93, %94 : vector<8x128xf32>
    %96 = math.tanh %95 : vector<8x128xf32>
    %97 = vector.broadcast %27 : f32 to vector<8x128xf32>
    %98 = arith.mulf %97, %96 : vector<8x128xf32>
    %99 = arith.addf %91, %98 : vector<8x128xf32>
    %100 = vector.broadcast %8 : f32 to vector<8x128xf32>
    %101 = arith.mulf %100, %34 : vector<8x128xf32>
    %102 = vector.broadcast %18 : f32 to vector<8x128xf32>
    %103 = arith.addf %101, %102 : vector<8x128xf32>
    %104 = math.tanh %103 : vector<8x128xf32>
    %105 = vector.broadcast %28 : f32 to vector<8x128xf32>
    %106 = arith.mulf %105, %104 : vector<8x128xf32>
    %107 = arith.addf %99, %106 : vector<8x128xf32>
    %108 = vector.broadcast %9 : f32 to vector<8x128xf32>
    %109 = arith.mulf %108, %34 : vector<8x128xf32>
    %110 = vector.broadcast %19 : f32 to vector<8x128xf32>
    %111 = arith.addf %109, %110 : vector<8x128xf32>
    %112 = math.tanh %111 : vector<8x128xf32>
    %113 = vector.broadcast %29 : f32 to vector<8x128xf32>
    %114 = arith.mulf %113, %112 : vector<8x128xf32>
    %115 = arith.addf %107, %114 : vector<8x128xf32>
    %116 = arith.index_cast %32 : i32 to index
    %c0_22 = arith.constant 0 : index
    %117 = vector.load %arg6[%116, %c0_22] : memref<8x128xf32, #tpu.memory_space<vmem>>, vector<8x128xf32>
    tpu.vector_store %arg6[%116, %c0_22], %115 {strides = array<i32>} : memref<8x128xf32, #tpu.memory_space<vmem>>, vector<8x128xf32>,
    %c1_i32 = arith.constant 1 : i32
    return
  }
  func.func @transform_0(%arg0: i32) -> (i32, i32) {
    %c0_i32 = arith.constant 0 : i32
    %c0_i32_0 = arith.constant 0 : i32
    return %arg0, %c0_i32 : i32, i32
  }
  func.func @transform_1(%arg0: i32) -> i32 {
    %c0_i32 = arith.constant 0 : i32
    %c0_i32_0 = arith.constant 0 : i32
    return %c0_i32 : i32
  }
  func.func @transform_2(%arg0: i32) -> i32 {
    %c0_i32 = arith.constant 0 : i32
    %c0_i32_0 = arith.constant 0 : i32
    return %c0_i32 : i32
  }
  func.func @transform_3(%arg0: i32) -> i32 {
    %c0_i32 = arith.constant 0 : i32
    %c0_i32_0 = arith.constant 0 : i32
    return %c0_i32 : i32
  }
  func.func @transform_4(%arg0: i32) -> i32 {
    %c0_i32 = arith.constant 0 : i32
    %c0_i32_0 = arith.constant 0 : i32
    return %c0_i32 : i32
  }
  func.func @transform_5(%arg0: i32) -> (i32, i32) {
    %c0_i32 = arith.constant 0 : i32
    %c0_i32_0 = arith.constant 0 : i32
    return %arg0, %c0_i32 : i32, i32
  }
}

</mosaic_0001>

<bundles_post_ra>
// kernel: tpu_custom_call.1
= control target key start
LH: loop header
LB: loop body
LE: loop exit
PB: predicated region body
PF: predicated region fallthrough
CT: control target
= control target key end

     0   :  { %11 = vsyncpa [#allocation4], 0  ;;  %s463_s0 = inlined_call_operand.hbm [shape: f32[8,128], index: 0, kind: input, shape index: {}]   ;;  %s464_s1 = inlined_call_operand.vmem [shape: f32[10], index: 1, kind: input, shape index: {}]   ;;  %s465_s2 = inlined_call_operand.vmem [shape: f32[10], index: 2, kind: input, shape index: {}]   ;;  %s466_s3 = inlined_call_operand.vmem [shape: f32[10], index: 3, kind: input, shape index: {}]   ;;  %s467_s4 = inlined_call_operand.<no memory space> [shape: f32[1], index: 4, kind: input, shape index: {}]   ;;  %s468_s5 = inlined_call_operand.hbm [shape: f32[8,128], index: 5, kind: output, shape index: {}]  }
   0x1   :  { %12 = vsyncpa [#allocation6], 0 }
   0x2   :  { %13 = vsyncpa [#allocation9], 0  ;;  %s41_s20 = sshll.u32 %s465_s2, 4  ;;  %s42_s20 = int_to_ptr.vmem [resolvable:$true] %s41_s20 }
   0x3   :  { %14 = vsyncpa [#allocation5], 0  ;;  %s253_s21 = scalar_lea.vmem %s42_s20, 16  ;;  %p258_p1 = scmp.lt.s32.totalorder %s42_s20, %s42_s20 }
   0x4   :  { %p254_p0 = scmp.ne.s32.totalorder %s42_s20, %s253_s21  ;;  %p259_p2 = scmp.lt.s32.totalorder %s253_s21, %s253_s21 }
   0x6   :  { %p260_p3 = por %p259_p2, %p258_p1 }
   0x8   :  { %p261_p4 = pnand %p260_p3, %p254_p0 }
   0xa   :  { %264 = shalt.err (!%p261_p4)
}
   0xb   :  { %s341_s22 = smov [#allocation8]   ;;  %s342_s23 = smov [#allocation3]  }
   0xc   :  { %44 = dma.vmem_to_smem %s42_s20, 16, %s341_s22, [#allocation9]  }
   0xd   :  { %s21_s24 = sshll.u32 %s342_s23, 4  ;;  %s31_s27 = sshll.u32 %s464_s1, 4  ;;  %s22_s24 = int_to_ptr.vmem [resolvable:$true] %s21_s24  ;;  %s32_s27 = int_to_ptr.vmem [resolvable:$true] %s31_s27 }
   0xe   :  { %s265_s29 = scalar_lea.hbm %s463_s0, 128 }
   0xf   :  { %p266_p5 = scmp.ne.s32.totalorder %s463_s0, %s265_s29  ;;  %p269_p6 = scmp.lt.u32.totalorder %s265_s29, %s463_s0 }
  0x11   :  { %p271_p7 = pnand %p269_p6, %p266_p5 }
  0x13   :  { %274 = shalt.err (!%p271_p7)
}
  0x14   :  { %s275_s9 = scalar_lea.vmem %s22_s24, 128  ;;  %p280_p9 = scmp.lt.s32.totalorder %s22_s24, %s22_s24 }
  0x15   :  { %p276_p8 = scmp.ne.s32.totalorder %s22_s24, %s275_s9  ;;  %p281_p10 = scmp.lt.s32.totalorder %s275_s9, %s275_s9 }
  0x17   :  { %p282_p11 = por %p281_p10, %p280_p9 }
  0x19   :  { %p283_p12 = pnand %p282_p11, %p276_p8 }
  0x1b   :  { %286 = shalt.err (!%p283_p12)
}
  0x1c   :  { %24 = dma.hbm_to_vmem [thread:$0]  %s463_s0, 128, %s22_s24, [#allocation4]  }
  0x1d   :  { %s51_s13 = sshll.u32 %s466_s3, 4  ;;  %s287_s14 = scalar_lea.vmem %s32_s27, 16  ;;  %s52_s13 = int_to_ptr.vmem [resolvable:$true] %s51_s13 }
  0x1e   :  { %p288_p13 = scmp.ne.s32.totalorder %s32_s27, %s287_s14  ;;  %p292_p0 = scmp.lt.s32.totalorder %s32_s27, %s32_s27 }
  0x1f   :  { %p293_p1 = scmp.lt.s32.totalorder %s287_s14, %s287_s14 }
  0x21   :  { %p294_p2 = por %p293_p1, %p292_p0 }
  0x23   :  { %p295_p3 = pnand %p294_p2, %p288_p13 }
  0x25   :  { %298 = shalt.err (!%p295_p3)
}
  0x26   :  { %s343_s15 = smov [#allocation7]   ;;  %s299_s16 = scalar_lea.vmem %s52_s13, 16 }
  0x27   :  { %34 = dma.vmem_to_smem %s32_s27, 16, %s343_s15, [#allocation6]  }
  0x28   :  { %p300_p4 = scmp.ne.s32.totalorder %s52_s13, %s299_s16  ;;  %p304_p5 = scmp.lt.s32.totalorder %s52_s13, %s52_s13 }
  0x29   :  { %p305_p6 = scmp.lt.s32.totalorder %s299_s16, %s299_s16 }
  0x2b   :  { %p306_p7 = por %p305_p6, %p304_p5 }
  0x2d   :  { %p307_p8 = pnand %p306_p7, %p300_p4 }
  0x2f   :  { %310 = shalt.err (!%p307_p8)
}
  0x30   :  { %s344_s0 = smov [#allocation10]  }
  0x31   :  { %54 = dma.vmem_to_smem %s52_s13, 16, %s344_s0, [#allocation9]  }
  0x32   :  { %333 = dma.done.wait [#allocation4], 128  }
  0x33   :  { %334 = vsyncadd [#allocation4], 4294967168 }
  0x34   :  { %335 = dma.done.wait [#allocation6], 16  }
  0x35   :  { %336 = vsyncadd [#allocation6], 4294967280 }
  0x36   :  { %337 = dma.done.wait [#allocation9], 32  }
  0x37   :  { %338 = vsyncadd [#allocation9], 4294967264 }
  0x38   :  { %69 = sfence }
  0x39   :  { %s70_s3 = sld [smem:[#allocation7]]  ;;  %s201_s17 = sld [smem:[#allocation7 + $0x1]]  ;;  %v101_v0 = vld [vmem:[#allocation3] sm:$0xff]  ;;  %v102_v43 = vstv %s467_s4 }
  0x3a   :  { %s202_s18 = sld [smem:[#allocation7 + $0x2]]  ;;  %s203_s19 = sld [smem:[#allocation7 + $0x3]] }
  0x3b   :  { %s204_s20 = sld [smem:[#allocation7 + $0x4]]  ;;  %s205_s21 = sld [smem:[#allocation7 + $0x5]] }
  0x3c   :  { %s397_s22 = sld [smem:[#allocation7 + $0x6]]  ;;  %s399_s23 = sld [smem:[#allocation7 + $0x7]] }
  0x3d   :  { %s401_s24 = sld [smem:[#allocation7 + $0x8]]  ;;  %s210_s26 = sld [smem:[#allocation8 + $0x1]] }
  0x3e   :  { %s80_s25 = sld [smem:[#allocation8]]  ;;  %s211_s27 = sld [smem:[#allocation8 + $0x2]] }
  0x3f   :  { %s212_s2 = sld [smem:[#allocation8 + $0x3]]  ;;  %v103_v1 = vstv %s70_s3  ;;  %v111_v2 = vstv %s201_s17  ;;  %s403_s28 = sld [smem:[#allocation8 + $0x4]] }
  0x40   :  { %s405_s29 = sld [smem:[#allocation8 + $0x5]]  ;;  %v119_v3 = vstv %s202_s18  ;;  %v127_v4 = vstv %s203_s19  ;;  %s407_s30 = sld [smem:[#allocation8 + $0x6]]  ;;  %v104_v5 = vmul.f32 %v103_v1, %v101_v0  ;;  %v112_v6 = vmul.f32 %v111_v2, %v101_v0 }
  0x41   :  { %v135_v7 = vstv %s204_s20  ;;  %v143_v8 = vstv %s205_s21  ;;  %s409_s6 = sld [smem:[#allocation7 + $0x9]]  ;;  %s411_s7 = sld [smem:[#allocation8 + $0x7]]  ;;  %v120_v9 = vmul.f32 %v119_v3, %v101_v0  ;;  %v128_v10 = vmul.f32 %v127_v4, %v101_v0 }
  0x42   :  { %v136_v11 = vmul.f32 %v135_v7, %v101_v0  ;;  %v144_v12 = vmul.f32 %v143_v8, %v101_v0  ;;  %s413_s8 = sld [smem:[#allocation8 + $0x8]]  ;;  %v151_v15 = vstv %s397_s22  ;;  %v159_v16 = vstv %s399_s23  ;;  %s417_s9 = sld [smem:[#allocation8 + $0x9]] }
  0x43   :  { %v113_v14 = vstv %s210_s26  ;;  %s421_s1 = sld [smem:[#allocation10]]  ;;  %v152_v26 = vmul.f32 %v151_v15, %v101_v0  ;;  %s423_s10 = sld [smem:[#allocation10 + $0x1]]  ;;  %v167_v28 = vstv %s401_s24  ;;  %v160_v30 = vmul.f32 %v159_v16, %v101_v0 }
  0x44   :  { %v105_v13 = vstv %s80_s25  ;;  %v114_v18 = vadd.f32 %v113_v14, %v112_v6  ;;  %v121_v19 = vstv %s211_s27  ;;  %s427_s11 = sld [smem:[#allocation10 + $0x2]]  ;;  %s431_s12 = sld [smem:[#allocation10 + $0x3]]  ;;  %v168_v34 = vmul.f32 %v167_v28, %v101_v0 }
  0x45   :  { %v106_v17 = vadd.f32 %v105_v13, %v104_v5  ;;  %v129_v20 = vstv %s212_s2  ;;  %v122_v21 = vadd.f32 %v121_v19, %v120_v9  ;;  %v137_v23 = vstv %s403_s28  ;;  %s434_s13 = sld [smem:[#allocation10 + $0x4]]  ;;  %s437_s14 = sld [smem:[#allocation10 + $0x5]] }
  0x46   :  { %v130_v22 = vadd.f32 %v129_v20, %v128_v10  ;;  %v145_v24 = vstv %s405_s29  ;;  %v138_v25 = vadd.f32 %v137_v23, %v136_v11  ;;  %v153_v27 = vstv %s407_s30  ;;  %s441_s15 = sld [smem:[#allocation10 + $0x6]]  ;;  %s225_s3 = sld [smem:[#allocation10 + $0x7]] }
  0x47   :  { %233 = vtanh.f32 %v106_v17  ;;  %v146_v29 = vadd.f32 %v145_v24, %v144_v12  ;;  %v161_v31 = vstv %s411_s7  ;;  %v175_v32 = vstv %s409_s6  ;;  %s226_s17 = sld [smem:[#allocation10 + $0x8]]  ;;  %s227_s4 = sld [smem:[#allocation10 + $0x9]] }
  0x48   :  { %235 = vtanh.f32 %v114_v18  ;;  %v154_v33 = vadd.f32 %v153_v27, %v152_v26  ;;  %v169_v35 = vstv %s413_s8  ;;  %v162_v36 = vadd.f32 %v161_v31, %v160_v30  ;;  %s345_s18 = smov [#allocation11]  }
  0x49   :  { %237 = vtanh.f32 %v122_v21  ;;  %v176_v37 = vmul.f32 %v175_v32, %v101_v0  ;;  %v177_v38 = vstv %s417_s9  ;;  %v108_v39 = vstv %s421_s1  ;;  %s190_s19 = sshll.u32 %s345_s18, 4  ;;  %s191_s19 = int_to_ptr.vmem [resolvable:$true] %s190_s19 }
  0x4a   :  { %239 = vtanh.f32 %v130_v22  ;;  %v170_v40 = vadd.f32 %v169_v35, %v168_v34  ;;  %v116_v41 = vstv %s423_s10  ;;  %v124_v44 = vstv %s427_s11  ;;  %s311_s20 = scalar_lea.vmem %s191_s19, 128  ;;  %p316_p10 = scmp.lt.s32.totalorder %s191_s19, %s191_s19 }
  0x4b   :  { %241 = vtanh.f32 %v138_v25  ;;  %v178_v45 = vadd.f32 %v177_v38, %v176_v37  ;;  %v132_v50 = vstv %s431_s12  ;;  %v140_v55 = vstv %s434_s13  ;;  %p312_p9 = scmp.ne.s32.totalorder %s191_s19, %s311_s20  ;;  %p317_p11 = scmp.lt.s32.totalorder %s311_s20, %s311_s20 }
  0x4c   :  { %243 = vtanh.f32 %v146_v29  ;;  %v148_v59 = vstv %s437_s14  ;;  %v156_v63 = vstv %s441_s15  ;;  %v164_v3 = vstv %s225_s3 }
  0x4d   :  { %245 = vtanh.f32 %v154_v33  ;;  %v172_v7 = vstv %s226_s17  ;;  %v180_v11 = vstv %s227_s4  ;;  %p318_p12 = por %p317_p11, %p316_p10 }
  0x4e   :  { %247 = vtanh.f32 %v162_v36 }
  0x4f   :  { %249 = vtanh.f32 %v170_v40  ;;  %p319_p13 = pnand %p318_p12, %p312_p9 }
  0x50   :  { %251 = vtanh.f32 %v178_v45 }
  0x51   :  { %v234_v42 = vpop.eup %233 }
  0x52   :  { %v236_v46 = vpop.eup %235  ;;  %v109_v47 = vmul.f32 %v234_v42, %v108_v39 }
  0x53   :  { %v238_v48 = vpop.eup %237  ;;  %v117_v49 = vmul.f32 %v236_v46, %v116_v41 }
  0x54   :  { %v240_v51 = vpop.eup %239  ;;  %v110_v52 = vadd.f32 %v109_v47, %v102_v43  ;;  %v125_v53 = vmul.f32 %v238_v48, %v124_v44 }
  0x55   :  { %v242_v54 = vpop.eup %241  ;;  %v133_v57 = vmul.f32 %v240_v51, %v132_v50 }
  0x56   :  { %v118_v56 = vadd.f32 %v117_v49, %v110_v52  ;;  %v244_v58 = vpop.eup %243  ;;  %v141_v61 = vmul.f32 %v242_v54, %v140_v55 }
  0x57   :  { %v246_v62 = vpop.eup %245  ;;  %v149_v1 = vmul.f32 %v244_v58, %v148_v59 }
  0x58   :  { %v126_v60 = vadd.f32 %v125_v53, %v118_v56  ;;  %v248_v2 = vpop.eup %247  ;;  %v157_v5 = vmul.f32 %v246_v62, %v156_v63 }
  0x59   :  { %v250_v6 = vpop.eup %249  ;;  %v165_v9 = vmul.f32 %v248_v2, %v164_v3 }
  0x5a   :  { %v134_v0 = vadd.f32 %v133_v57, %v126_v60  ;;  %v252_v10 = vpop.eup %251  ;;  %v173_v13 = vmul.f32 %v250_v6, %v172_v7 }
  0x5b   :  { %v181_v15 = vmul.f32 %v252_v10, %v180_v11 }
  0x5c   :  { %v142_v4 = vadd.f32 %v141_v61, %v134_v0 }
  0x5e   :  { %v150_v8 = vadd.f32 %v149_v1, %v142_v4 }
  0x60   :  { %v158_v12 = vadd.f32 %v157_v5, %v150_v8 }
  0x62   :  { %v166_v14 = vadd.f32 %v165_v9, %v158_v12 }
  0x64   :  { %v174_v16 = vadd.f32 %v173_v13, %v166_v14 }
  0x66   :  { %v182_v17 = vadd.f32 %v181_v15, %v174_v16 }
  0x68   :  { %183 = vst [vmem:[#allocation11] sm:$0xff] %v182_v17 }
  0x69   :  { %322 = shalt.err (!%p319_p13)
}
  0x6a   :  { %s323_s23 = scalar_lea.hbm %s468_s5, 128 }
  0x6b   :  { %p324_p0 = scmp.ne.s32.totalorder %s468_s5, %s323_s23  ;;  %p327_p1 = scmp.lt.u32.totalorder %s323_s23, %s468_s5 }
  0x6d   :  { %p329_p2 = pnand %p327_p1, %p324_p0 }
  0x6f   :  { %332 = shalt.err (!%p329_p2)
}
  0x70   :  { %193 = dma.vmem_to_hbm [thread:$0]  %s191_s19, 128, %s468_s5, [#allocation5]  }
  0x71   :  { %339 = dma.done.wait [#allocation5], 128  }
  0x72   :  { %340 = vsyncadd [#allocation5], 4294967168 }
  0x73   :  { %197 = vsyncpa [#allocation4], 1 }
  0x74   :  { %198 = vsyncpa [#allocation5], 1 }
  0x75   :  { %199 = vsyncpa [#allocation6], 1 }
  0x76   :  { %200 = vsyncpa [#allocation9], 1 }

</bundles_post_ra>
